<compile_context>
chip_gen: v7x
topology: tpu7x:2x2x1
jax: 0.10.0
libtpu: 0.0.40
codegen_flags: <defaults>
</compile_context>

<pallas_src>
import jax
import jax.numpy as jnp
from jax.experimental import pallas as pl
from jax.experimental.pallas import tpu as pltpu

INPUT_DIM = 83   # nn.LSTM(83, hid_dim)
KPAD = 128       # padded contraction / lane dim for clean (8,128) tiles


def lstm_classifier_kernel(x_ref, wih_ref, bias_ref, whh_ref, wcls_ref, bcls_ref,
                           out_ref):
    """Hoisted input projection + fully unrolled LSTM recurrence + deferred classifier."""
    T = out_ref.shape[0]
    H = whh_ref.shape[0]
    B = x_ref.shape[0] // T

    # --- Prologue (off the serial path): G = x @ W_ih^T + (b_ih + b_hh) ---------
    g_all = jnp.dot(x_ref[...], wih_ref[...],
                    preferred_element_type=jnp.float32)           # (T*B, 4H) f32
    g_all = g_all + bias_ref[...]                                  # broadcast (1,4H)

    whh = whh_ref[...]                                             # (H,4H) bf16, resident

    def nonlin(gates):
        # Two full-(B,4H)-vreg EUP pushes (sigmoid + tanh) instead of four
        # quarter-vreg ones; the lane extractions below lower to XLU rotates
        # (same effect as pltpu.roll + low-lane slice), off the VALU path.
        sig = jax.nn.sigmoid(gates)
        tnh = jnp.tanh(gates)
        return (sig[:, 0 * H:1 * H],      # i
                sig[:, 1 * H:2 * H],      # f
                tnh[:, 2 * H:3 * H],      # g
                sig[:, 3 * H:4 * H])      # o

    # --- t = 0: h = c = 0 -> gates = G[0:B]; no recurrence matmul, no f*c term --
    i_g, _f_g, g_g, o_g = nonlin(g_all[0:B, :])
    c = i_g * g_g
    h = o_g * jnp.tanh(c)
    rows = [h[B - 1:B, :]]    # out[:, -1] semantics: last batch row at every step

    # --- t = 1 .. T-1: only h @ W_hh^T (bf16 x bf16 -> f32 MXU) on serial path --
    for t in range(1, T):
        gates = g_all[t * B:(t + 1) * B, :] + jnp.dot(
            h.astype(jnp.bfloat16), whh, preferred_element_type=jnp.float32)
        i_g, f_g, g_g, o_g = nonlin(gates)
        c = f_g * c + i_g * g_g
        h = o_g * jnp.tanh(c)
        rows.append(h[B - 1:B, :])

    # --- Deferred, lane-dense classifier: one (T,H)@(H,128) matmul, SMEM scalar
    #     bias, single unmasked (T,128) store (only column 0 is meaningful). -----
    hs = jnp.concatenate(rows, axis=0)                             # (T, H)
    logits = jnp.dot(hs, wcls_ref[...],
                     preferred_element_type=jnp.float32) + bcls_ref[0, 0]
    out_ref[...] = jax.nn.sigmoid(logits)


def prepare_params(params):
    """One-time (model-load) parameter prep; keeps it off the per-call path."""
    H = params["w_hh"].shape[1]
    wih_t = jnp.asarray(params["w_ih"], jnp.float32).T             # (83, 4H)
    wih_p = jnp.pad(wih_t, ((0, KPAD - INPUT_DIM), (0, 0)))        # (128, 4H)
    bias = (params["b_ih"] + params["b_hh"]).reshape(1, 4 * H).astype(jnp.float32)
    whh_t = jnp.asarray(params["w_hh"], jnp.float32).T.astype(jnp.bfloat16)  # (H,4H) bf16
    wcls_t = jnp.asarray(params["w_cls"], jnp.float32).T           # (H, 1)
    wcls_p = jnp.pad(wcls_t, ((0, 0), (0, KPAD - 1)))              # (H, 128), col 0 valid
    bcls = params["b_cls"].reshape(1, 1).astype(jnp.float32)       # (1, 1) -> SMEM
    return {"wih_p": wih_p, "bias": bias, "whh_t": whh_t,
            "wcls_p": wcls_p, "bcls": bcls}


@jax.jit
def lstm_classifier_forward(x, prep):
    T, B, F = x.shape
    H = prep["whh_t"].shape[0]

    # Per-call input prep: free reshape + a single jnp.pad.
    x_flat = jnp.pad(x.reshape(T * B, F).astype(jnp.float32),
                     ((0, 0), (0, KPAD - F)))                      # (T*B, 128)

    grid_spec = pltpu.PrefetchScalarGridSpec(
        num_scalar_prefetch=0,
        grid=(1,),   # single invocation: whole problem resident in VMEM (~0.2 MiB)
        in_specs=[
            pl.BlockSpec((T * B, KPAD), lambda i: (0, 0)),         # padded x (flat)
            pl.BlockSpec((KPAD, 4 * H), lambda i: (0, 0)),         # W_ih^T (row-padded)
            pl.BlockSpec((1, 4 * H), lambda i: (0, 0)),            # b_ih + b_hh
            pl.BlockSpec((H, 4 * H), lambda i: (0, 0)),            # W_hh^T (bf16)
            pl.BlockSpec((H, KPAD), lambda i: (0, 0)),             # classifier weight (lane-dense)
            pl.BlockSpec(memory_space=pltpu.MemorySpace.SMEM),     # classifier bias scalar
        ],
        out_specs=pl.BlockSpec((T, KPAD), lambda i: (0, 0)),
    )

    out = pl.pallas_call(
        lstm_classifier_kernel,
        out_shape=jax.ShapeDtypeStruct((T, KPAD), jnp.float32),
        grid_spec=grid_spec,
        compiler_params=pltpu.CompilerParams(
            dimension_semantics=("arbitrary",)),
    )(x_flat, prep["wih_p"], prep["bias"], prep["whh_t"], prep["wcls_p"], prep["bcls"])
    return out[:, :1]                                              # (T, 1)


def reference_forward(x, params):
    """Pure-JAX f32 reference mirroring the PyTorch forward."""
    T, B, F = x.shape
    H = params["w_hh"].shape[1]

    def step(carry, x_t):
        h, c = carry
        gates = (x_t @ params["w_ih"].T + h @ params["w_hh"].T
                 + params["b_ih"] + params["b_hh"])
        i_g = jax.nn.sigmoid(gates[:, 0 * H:1 * H])
        f_g = jax.nn.sigmoid(gates[:, 1 * H:2 * H])
        g_g = jnp.tanh(gates[:, 2 * H:3 * H])
        o_g = jax.nn.sigmoid(gates[:, 3 * H:4 * H])
        c = f_g * c + i_g * g_g
        h = o_g * jnp.tanh(c)
        return (h, c), h

    init = (jnp.zeros((B, H), jnp.float32), jnp.zeros((B, H), jnp.float32))
    _, outs = jax.lax.scan(step, init, x)          # (T, B, H)
    sel = outs[:, -1, :]                           # out[:, -1] -> (T, H)
    return jax.nn.sigmoid(sel @ params["w_cls"].T + params["b_cls"])


def init_params(key, hid_dim):
    """Deterministic parameter init (PyTorch-style uniform(-1/sqrt(H), 1/sqrt(H)))."""
    k = 1.0 / jnp.sqrt(hid_dim)
    ks = jax.random.split(key, 6)
    return {
        "w_ih": jax.random.uniform(ks[0], (4 * hid_dim, INPUT_DIM), jnp.float32, -k, k),
        "w_hh": jax.random.uniform(ks[1], (4 * hid_dim, hid_dim), jnp.float32, -k, k),
        "b_ih": jax.random.uniform(ks[2], (4 * hid_dim,), jnp.float32, -k, k),
        "b_hh": jax.random.uniform(ks[3], (4 * hid_dim,), jnp.float32, -k, k),
        "w_cls": jax.random.uniform(ks[4], (1, hid_dim), jnp.float32, -k, k),
        "b_cls": jax.random.uniform(ks[5], (1,), jnp.float32, -k, k),
    }


if __name__ == "__main__":
    T, B, HID = 8, 8, 32
    key = jax.random.PRNGKey(0)
    k_x, k_p = jax.random.split(key)

    x = jax.random.normal(k_x, (T, B, INPUT_DIM), dtype=jnp.float32)
    params = init_params(k_p, HID)
    prep = prepare_params(params)          # one-time weight prep, off the per-call path

    out = lstm_classifier_forward(x, prep)
    jax.block_until_ready(out)

    ref = reference_forward(x, params)
    assert out.shape == (T, 1), out.shape
    # Tolerance loosened vs. the all-f32 variant because the recurrence matmul uses
    # bf16 MXU operands (f32 accumulate); observed end-to-end error is ~1e-3.
    assert jnp.allclose(out, ref, rtol=2e-2, atol=2e-2), (
        f"max abs err = {jnp.max(jnp.abs(out - ref))}")
    # TODO(synk): the torch forward's `print(out[-1].shape)` is a host-side debug
    # print with no kernel equivalent; omitted.
    print("KERNEL_OK")
</pallas_src>

<mosaic_0001>
module attributes {stable_mosaic.version = 11 : i64} {
  func.func @lstm_classifier_kernel(%arg0: i32, %arg1: memref<64x128xf32, #tpu.memory_space<vmem>>, %arg2: memref<128x128xf32, #tpu.memory_space<vmem>>, %arg3: memref<1x128xf32, #tpu.memory_space<vmem>>, %arg4: memref<32x128xbf16, #tpu.memory_space<vmem>>, %arg5: memref<32x128xf32, #tpu.memory_space<vmem>>, %arg6: memref<1x1xf32, #tpu.memory_space<smem>>, %arg7: memref<8x128xf32, #tpu.memory_space<vmem>>) attributes {dimension_semantics = [#tpu.dimension_semantics<arbitrary>], iteration_bounds = array<i64: 1>, scalar_prefetch = 0 : i64, scratch_operands = 0 : i64, tpu.core_type = #tpu.core_type<tc>, window_params = [{pipeline_mode = #tpu.pipeline_mode<synchronous>, transform_indices = @transform_0, window_bounds = array<i64: 64, 128>}, {pipeline_mode = #tpu.pipeline_mode<synchronous>, transform_indices = @transform_1, window_bounds = array<i64: 128, 128>}, {pipeline_mode = #tpu.pipeline_mode<synchronous>, transform_indices = @transform_2, window_bounds = array<i64: 1, 128>}, {pipeline_mode = #tpu.pipeline_mode<synchronous>, transform_indices = @transform_3, window_bounds = array<i64: 32, 128>}, {pipeline_mode = #tpu.pipeline_mode<synchronous>, transform_indices = @transform_4, window_bounds = array<i64: 32, 128>}, {transform_indices = @transform_5, window_bounds = array<i64: 1, 1>}, {pipeline_mode = #tpu.pipeline_mode<synchronous>, transform_indices = @transform_6, window_bounds = array<i64: 8, 128>}]} {
    %c0 = arith.constant 0 : index
    %c0_0 = arith.constant 0 : index
    %0 = vector.load %arg1[%c0, %c0_0] : memref<64x128xf32, #tpu.memory_space<vmem>>, vector<64x128xf32>
    %c0_1 = arith.constant 0 : index
    %c0_2 = arith.constant 0 : index
    %1 = vector.load %arg2[%c0_1, %c0_2] : memref<128x128xf32, #tpu.memory_space<vmem>>, vector<128x128xf32>
    %cst = arith.constant dense<0.000000e+00> : vector<64x128xf32>
    %2 = tpu.matmul %0, %1, %cst {dimension_numbers = #tpu.dot_dimension_numbers<[1], [0], [0], [1], [0, 0, 1, 1], [], []>} : vector<64x128xf32>, vector<128x128xf32>, vector<64x128xf32> -> vector<64x128xf32>
    %c0_3 = arith.constant 0 : index
    %c0_4 = arith.constant 0 : index
    %3 = vector.load %arg3[%c0_3, %c0_4] : memref<1x128xf32, #tpu.memory_space<vmem>>, vector<1x128xf32>
    %4 = vector.broadcast %3 : vector<1x128xf32> to vector<64x128xf32>
    %5 = arith.addf %2, %4 : vector<64x128xf32>
    %c0_5 = arith.constant 0 : index
    %c0_6 = arith.constant 0 : index
    %6 = vector.load %arg4[%c0_5, %c0_6] : memref<32x128xbf16, #tpu.memory_space<vmem>>, vector<32x128xbf16>
    %7 = vector.extract_strided_slice %5 {offsets = [0, 0], sizes = [8, 128], strides = [1, 1]} : vector<64x128xf32> to vector<8x128xf32>
    %8 = arith.negf %7 : vector<8x128xf32>
    %9 = math.exp %8 : vector<8x128xf32>
    %cst_7 = arith.constant 1.000000e+00 : f32
    %10 = vector.broadcast %cst_7 : f32 to vector<8x128xf32>
    %11 = arith.addf %10, %9 : vector<8x128xf32>
    %12 = arith.divf %10, %11 : vector<8x128xf32>
    %13 = math.tanh %7 : vector<8x128xf32>
    %14 = vector.extract_strided_slice %12 {offsets = [0, 0], sizes = [8, 32], strides = [1, 1]} : vector<8x128xf32> to vector<8x32xf32>
    %15 = vector.extract_strided_slice %13 {offsets = [0, 64], sizes = [8, 32], strides = [1, 1]} : vector<8x128xf32> to vector<8x32xf32>
    %16 = vector.extract_strided_slice %12 {offsets = [0, 96], sizes = [8, 32], strides = [1, 1]} : vector<8x128xf32> to vector<8x32xf32>
    %17 = arith.mulf %14, %15 : vector<8x32xf32>
    %18 = math.tanh %17 : vector<8x32xf32>
    %19 = arith.mulf %16, %18 : vector<8x32xf32>
    %20 = vector.extract_strided_slice %19 {offsets = [7, 0], sizes = [1, 32], strides = [1, 1]} : vector<8x32xf32> to vector<1x32xf32>
    %21 = vector.extract_strided_slice %5 {offsets = [8, 0], sizes = [8, 128], strides = [1, 1]} : vector<64x128xf32> to vector<8x128xf32>
    %22 = arith.truncf %19 : vector<8x32xf32> to vector<8x32xbf16>
    %cst_8 = arith.constant dense<0.000000e+00> : vector<8x128xf32>
    %23 = tpu.matmul %22, %6, %cst_8 {dimension_numbers = #tpu.dot_dimension_numbers<[1], [0], [0], [1], [0, 0, 1, 1], [], []>} : vector<8x32xbf16>, vector<32x128xbf16>, vector<8x128xf32> -> vector<8x128xf32>
    %24 = arith.addf %21, %23 : vector<8x128xf32>
    %25 = arith.negf %24 : vector<8x128xf32>
    %26 = math.exp %25 : vector<8x128xf32>
    %cst_9 = arith.constant 1.000000e+00 : f32
    %27 = vector.broadcast %cst_9 : f32 to vector<8x128xf32>
    %28 = arith.addf %27, %26 : vector<8x128xf32>
    %29 = arith.divf %27, %28 : vector<8x128xf32>
    %30 = math.tanh %24 : vector<8x128xf32>
    %31 = vector.extract_strided_slice %29 {offsets = [0, 0], sizes = [8, 32], strides = [1, 1]} : vector<8x128xf32> to vector<8x32xf32>
    %32 = vector.extract_strided_slice %29 {offsets = [0, 32], sizes = [8, 32], strides = [1, 1]} : vector<8x128xf32> to vector<8x32xf32>
    %33 = vector.extract_strided_slice %30 {offsets = [0, 64], sizes = [8, 32], strides = [1, 1]} : vector<8x128xf32> to vector<8x32xf32>
    %34 = vector.extract_strided_slice %29 {offsets = [0, 96], sizes = [8, 32], strides = [1, 1]} : vector<8x128xf32> to vector<8x32xf32>
    %35 = arith.mulf %32, %17 : vector<8x32xf32>
    %36 = arith.mulf %31, %33 : vector<8x32xf32>
    %37 = arith.addf %35, %36 : vector<8x32xf32>
    %38 = math.tanh %37 : vector<8x32xf32>
    %39 = arith.mulf %34, %38 : vector<8x32xf32>
    %40 = vector.extract_strided_slice %39 {offsets = [7, 0], sizes = [1, 32], strides = [1, 1]} : vector<8x32xf32> to vector<1x32xf32>
    %41 = vector.extract_strided_slice %5 {offsets = [16, 0], sizes = [8, 128], strides = [1, 1]} : vector<64x128xf32> to vector<8x128xf32>
    %42 = arith.truncf %39 : vector<8x32xf32> to vector<8x32xbf16>
    %cst_10 = arith.constant dense<0.000000e+00> : vector<8x128xf32>
    %43 = tpu.matmul %42, %6, %cst_10 {dimension_numbers = #tpu.dot_dimension_numbers<[1], [0], [0], [1], [0, 0, 1, 1], [], []>} : vector<8x32xbf16>, vector<32x128xbf16>, vector<8x128xf32> -> vector<8x128xf32>
    %44 = arith.addf %41, %43 : vector<8x128xf32>
    %45 = arith.negf %44 : vector<8x128xf32>
    %46 = math.exp %45 : vector<8x128xf32>
    %cst_11 = arith.constant 1.000000e+00 : f32
    %47 = vector.broadcast %cst_11 : f32 to vector<8x128xf32>
    %48 = arith.addf %47, %46 : vector<8x128xf32>
    %49 = arith.divf %47, %48 : vector<8x128xf32>
    %50 = math.tanh %44 : vector<8x128xf32>
    %51 = vector.extract_strided_slice %49 {offsets = [0, 0], sizes = [8, 32], strides = [1, 1]} : vector<8x128xf32> to vector<8x32xf32>
    %52 = vector.extract_strided_slice %49 {offsets = [0, 32], sizes = [8, 32], strides = [1, 1]} : vector<8x128xf32> to vector<8x32xf32>
    %53 = vector.extract_strided_slice %50 {offsets = [0, 64], sizes = [8, 32], strides = [1, 1]} : vector<8x128xf32> to vector<8x32xf32>
    %54 = vector.extract_strided_slice %49 {offsets = [0, 96], sizes = [8, 32], strides = [1, 1]} : vector<8x128xf32> to vector<8x32xf32>
    %55 = arith.mulf %52, %37 : vector<8x32xf32>
    %56 = arith.mulf %51, %53 : vector<8x32xf32>
    %57 = arith.addf %55, %56 : vector<8x32xf32>
    %58 = math.tanh %57 : vector<8x32xf32>
    %59 = arith.mulf %54, %58 : vector<8x32xf32>
    %60 = vector.extract_strided_slice %59 {offsets = [7, 0], sizes = [1, 32], strides = [1, 1]} : vector<8x32xf32> to vector<1x32xf32>
    %61 = vector.extract_strided_slice %5 {offsets = [24, 0], sizes = [8, 128], strides = [1, 1]} : vector<64x128xf32> to vector<8x128xf32>
    %62 = arith.truncf %59 : vector<8x32xf32> to vector<8x32xbf16>
    %cst_12 = arith.constant dense<0.000000e+00> : vector<8x128xf32>
    %63 = tpu.matmul %62, %6, %cst_12 {dimension_numbers = #tpu.dot_dimension_numbers<[1], [0], [0], [1], [0, 0, 1, 1], [], []>} : vector<8x32xbf16>, vector<32x128xbf16>, vector<8x128xf32> -> vector<8x128xf32>
    %64 = arith.addf %61, %63 : vector<8x128xf32>
    %65 = arith.negf %64 : vector<8x128xf32>
    %66 = math.exp %65 : vector<8x128xf32>
    %cst_13 = arith.constant 1.000000e+00 : f32
    %67 = vector.broadcast %cst_13 : f32 to vector<8x128xf32>
    %68 = arith.addf %67, %66 : vector<8x128xf32>
    %69 = arith.divf %67, %68 : vector<8x128xf32>
    %70 = math.tanh %64 : vector<8x128xf32>
    %71 = vector.extract_strided_slice %69 {offsets = [0, 0], sizes = [8, 32], strides = [1, 1]} : vector<8x128xf32> to vector<8x32xf32>
    %72 = vector.extract_strided_slice %69 {offsets = [0, 32], sizes = [8, 32], strides = [1, 1]} : vector<8x128xf32> to vector<8x32xf32>
    %73 = vector.extract_strided_slice %70 {offsets = [0, 64], sizes = [8, 32], strides = [1, 1]} : vector<8x128xf32> to vector<8x32xf32>
    %74 = vector.extract_strided_slice %69 {offsets = [0, 96], sizes = [8, 32], strides = [1, 1]} : vector<8x128xf32> to vector<8x32xf32>
    %75 = arith.mulf %72, %57 : vector<8x32xf32>
    %76 = arith.mulf %71, %73 : vector<8x32xf32>
    %77 = arith.addf %75, %76 : vector<8x32xf32>
    %78 = math.tanh %77 : vector<8x32xf32>
    %79 = arith.mulf %74, %78 : vector<8x32xf32>
    %80 = vector.extract_strided_slice %79 {offsets = [7, 0], sizes = [1, 32], strides = [1, 1]} : vector<8x32xf32> to vector<1x32xf32>
    %81 = vector.extract_strided_slice %5 {offsets = [32, 0], sizes = [8, 128], strides = [1, 1]} : vector<64x128xf32> to vector<8x128xf32>
    %82 = arith.truncf %79 : vector<8x32xf32> to vector<8x32xbf16>
    %cst_14 = arith.constant dense<0.000000e+00> : vector<8x128xf32>
    %83 = tpu.matmul %82, %6, %cst_14 {dimension_numbers = #tpu.dot_dimension_numbers<[1], [0], [0], [1], [0, 0, 1, 1], [], []>} : vector<8x32xbf16>, vector<32x128xbf16>, vector<8x128xf32> -> vector<8x128xf32>
    %84 = arith.addf %81, %83 : vector<8x128xf32>
    %85 = arith.negf %84 : vector<8x128xf32>
    %86 = math.exp %85 : vector<8x128xf32>
    %cst_15 = arith.constant 1.000000e+00 : f32
    %87 = vector.broadcast %cst_15 : f32 to vector<8x128xf32>
    %88 = arith.addf %87, %86 : vector<8x128xf32>
    %89 = arith.divf %87, %88 : vector<8x128xf32>
    %90 = math.tanh %84 : vector<8x128xf32>
    %91 = vector.extract_strided_slice %89 {offsets = [0, 0], sizes = [8, 32], strides = [1, 1]} : vector<8x128xf32> to vector<8x32xf32>
    %92 = vector.extract_strided_slice %89 {offsets = [0, 32], sizes = [8, 32], strides = [1, 1]} : vector<8x128xf32> to vector<8x32xf32>
    %93 = vector.extract_strided_slice %90 {offsets = [0, 64], sizes = [8, 32], strides = [1, 1]} : vector<8x128xf32> to vector<8x32xf32>
    %94 = vector.extract_strided_slice %89 {offsets = [0, 96], sizes = [8, 32], strides = [1, 1]} : vector<8x128xf32> to vector<8x32xf32>
    %95 = arith.mulf %92, %77 : vector<8x32xf32>
    %96 = arith.mulf %91, %93 : vector<8x32xf32>
    %97 = arith.addf %95, %96 : vector<8x32xf32>
    %98 = math.tanh %97 : vector<8x32xf32>
    %99 = arith.mulf %94, %98 : vector<8x32xf32>
    %100 = vector.extract_strided_slice %99 {offsets = [7, 0], sizes = [1, 32], strides = [1, 1]} : vector<8x32xf32> to vector<1x32xf32>
    %101 = vector.extract_strided_slice %5 {offsets = [40, 0], sizes = [8, 128], strides = [1, 1]} : vector<64x128xf32> to vector<8x128xf32>
    %102 = arith.truncf %99 : vector<8x32xf32> to vector<8x32xbf16>
    %cst_16 = arith.constant dense<0.000000e+00> : vector<8x128xf32>
    %103 = tpu.matmul %102, %6, %cst_16 {dimension_numbers = #tpu.dot_dimension_numbers<[1], [0], [0], [1], [0, 0, 1, 1], [], []>} : vector<8x32xbf16>, vector<32x128xbf16>, vector<8x128xf32> -> vector<8x128xf32>
    %104 = arith.addf %101, %103 : vector<8x128xf32>
    %105 = arith.negf %104 : vector<8x128xf32>
    %106 = math.exp %105 : vector<8x128xf32>
    %cst_17 = arith.constant 1.000000e+00 : f32
    %107 = vector.broadcast %cst_17 : f32 to vector<8x128xf32>
    %108 = arith.addf %107, %106 : vector<8x128xf32>
    %109 = arith.divf %107, %108 : vector<8x128xf32>
    %110 = math.tanh %104 : vector<8x128xf32>
    %111 = vector.extract_strided_slice %109 {offsets = [0, 0], sizes = [8, 32], strides = [1, 1]} : vector<8x128xf32> to vector<8x32xf32>
    %112 = vector.extract_strided_slice %109 {offsets = [0, 32], sizes = [8, 32], strides = [1, 1]} : vector<8x128xf32> to vector<8x32xf32>
    %113 = vector.extract_strided_slice %110 {offsets = [0, 64], sizes = [8, 32], strides = [1, 1]} : vector<8x128xf32> to vector<8x32xf32>
    %114 = vector.extract_strided_slice %109 {offsets = [0, 96], sizes = [8, 32], strides = [1, 1]} : vector<8x128xf32> to vector<8x32xf32>
    %115 = arith.mulf %112, %97 : vector<8x32xf32>
    %116 = arith.mulf %111, %113 : vector<8x32xf32>
    %117 = arith.addf %115, %116 : vector<8x32xf32>
    %118 = math.tanh %117 : vector<8x32xf32>
    %119 = arith.mulf %114, %118 : vector<8x32xf32>
    %120 = vector.extract_strided_slice %119 {offsets = [7, 0], sizes = [1, 32], strides = [1, 1]} : vector<8x32xf32> to vector<1x32xf32>
    %121 = vector.extract_strided_slice %5 {offsets = [48, 0], sizes = [8, 128], strides = [1, 1]} : vector<64x128xf32> to vector<8x128xf32>
    %122 = arith.truncf %119 : vector<8x32xf32> to vector<8x32xbf16>
    %cst_18 = arith.constant dense<0.000000e+00> : vector<8x128xf32>
    %123 = tpu.matmul %122, %6, %cst_18 {dimension_numbers = #tpu.dot_dimension_numbers<[1], [0], [0], [1], [0, 0, 1, 1], [], []>} : vector<8x32xbf16>, vector<32x128xbf16>, vector<8x128xf32> -> vector<8x128xf32>
    %124 = arith.addf %121, %123 : vector<8x128xf32>
    %125 = arith.negf %124 : vector<8x128xf32>
    %126 = math.exp %125 : vector<8x128xf32>
    %cst_19 = arith.constant 1.000000e+00 : f32
    %127 = vector.broadcast %cst_19 : f32 to vector<8x128xf32>
    %128 = arith.addf %127, %126 : vector<8x128xf32>
    %129 = arith.divf %127, %128 : vector<8x128xf32>
    %130 = math.tanh %124 : vector<8x128xf32>
    %131 = vector.extract_strided_slice %129 {offsets = [0, 0], sizes = [8, 32], strides = [1, 1]} : vector<8x128xf32> to vector<8x32xf32>
    %132 = vector.extract_strided_slice %129 {offsets = [0, 32], sizes = [8, 32], strides = [1, 1]} : vector<8x128xf32> to vector<8x32xf32>
    %133 = vector.extract_strided_slice %130 {offsets = [0, 64], sizes = [8, 32], strides = [1, 1]} : vector<8x128xf32> to vector<8x32xf32>
    %134 = vector.extract_strided_slice %129 {offsets = [0, 96], sizes = [8, 32], strides = [1, 1]} : vector<8x128xf32> to vector<8x32xf32>
    %135 = arith.mulf %132, %117 : vector<8x32xf32>
    %136 = arith.mulf %131, %133 : vector<8x32xf32>
    %137 = arith.addf %135, %136 : vector<8x32xf32>
    %138 = math.tanh %137 : vector<8x32xf32>
    %139 = arith.mulf %134, %138 : vector<8x32xf32>
    %140 = vector.extract_strided_slice %139 {offsets = [7, 0], sizes = [1, 32], strides = [1, 1]} : vector<8x32xf32> to vector<1x32xf32>
    %141 = vector.extract_strided_slice %5 {offsets = [56, 0], sizes = [8, 128], strides = [1, 1]} : vector<64x128xf32> to vector<8x128xf32>
    %142 = arith.truncf %139 : vector<8x32xf32> to vector<8x32xbf16>
    %cst_20 = arith.constant dense<0.000000e+00> : vector<8x128xf32>
    %143 = tpu.matmul %142, %6, %cst_20 {dimension_numbers = #tpu.dot_dimension_numbers<[1], [0], [0], [1], [0, 0, 1, 1], [], []>} : vector<8x32xbf16>, vector<32x128xbf16>, vector<8x128xf32> -> vector<8x128xf32>
    %144 = arith.addf %141, %143 : vector<8x128xf32>
    %145 = arith.negf %144 : vector<8x128xf32>
    %146 = math.exp %145 : vector<8x128xf32>
    %cst_21 = arith.constant 1.000000e+00 : f32
    %147 = vector.broadcast %cst_21 : f32 to vector<8x128xf32>
    %148 = arith.addf %147, %146 : vector<8x128xf32>
    %149 = arith.divf %147, %148 : vector<8x128xf32>
    %150 = math.tanh %144 : vector<8x128xf32>
    %151 = vector.extract_strided_slice %149 {offsets = [0, 0], sizes = [8, 32], strides = [1, 1]} : vector<8x128xf32> to vector<8x32xf32>
    %152 = vector.extract_strided_slice %149 {offsets = [0, 32], sizes = [8, 32], strides = [1, 1]} : vector<8x128xf32> to vector<8x32xf32>
    %153 = vector.extract_strided_slice %150 {offsets = [0, 64], sizes = [8, 32], strides = [1, 1]} : vector<8x128xf32> to vector<8x32xf32>
    %154 = vector.extract_strided_slice %149 {offsets = [0, 96], sizes = [8, 32], strides = [1, 1]} : vector<8x128xf32> to vector<8x32xf32>
    %155 = arith.mulf %152, %137 : vector<8x32xf32>
    %156 = arith.mulf %151, %153 : vector<8x32xf32>
    %157 = arith.addf %155, %156 : vector<8x32xf32>
    %158 = math.tanh %157 : vector<8x32xf32>
    %159 = arith.mulf %154, %158 : vector<8x32xf32>
    %160 = vector.extract_strided_slice %159 {offsets = [7, 0], sizes = [1, 32], strides = [1, 1]} : vector<8x32xf32> to vector<1x32xf32>
    %161 = tpu.concatenate %20, %40, %60, %80, %100, %120, %140, %160 in 0 : vector<1x32xf32>, vector<1x32xf32>, vector<1x32xf32>, vector<1x32xf32>, vector<1x32xf32>, vector<1x32xf32>, vector<1x32xf32>, vector<1x32xf32> -> vector<8x32xf32>
    %c0_22 = arith.constant 0 : index
    %c0_23 = arith.constant 0 : index
    %162 = vector.load %arg5[%c0_22, %c0_23] : memref<32x128xf32, #tpu.memory_space<vmem>>, vector<32x128xf32>
    %cst_24 = arith.constant dense<0.000000e+00> : vector<8x128xf32>
    %163 = tpu.matmul %161, %162, %cst_24 {dimension_numbers = #tpu.dot_dimension_numbers<[1], [0], [0], [1], [0, 0, 1, 1], [], []>} : vector<8x32xf32>, vector<32x128xf32>, vector<8x128xf32> -> vector<8x128xf32>
    %c0_25 = arith.constant 0 : index
    %c0_26 = arith.constant 0 : index
    %164 = memref.load %arg6[%c0_25, %c0_26] : memref<1x1xf32, #tpu.memory_space<smem>>
    %165 = vector.broadcast %164 : f32 to vector<8x128xf32>
    %166 = arith.addf %163, %165 : vector<8x128xf32>
    %167 = arith.negf %166 : vector<8x128xf32>
    %168 = math.exp %167 : vector<8x128xf32>
    %cst_27 = arith.constant 1.000000e+00 : f32
    %169 = vector.broadcast %cst_27 : f32 to vector<8x128xf32>
    %170 = arith.addf %169, %168 : vector<8x128xf32>
    %171 = arith.divf %169, %170 : vector<8x128xf32>
    %c0_28 = arith.constant 0 : index
    %c0_29 = arith.constant 0 : index
    %172 = vector.load %arg7[%c0_28, %c0_29] : memref<8x128xf32, #tpu.memory_space<vmem>>, vector<8x128xf32>
    tpu.vector_store %arg7[%c0_28, %c0_29], %171 {strides = array<i32>} : memref<8x128xf32, #tpu.memory_space<vmem>>, vector<8x128xf32>,
    return
  }
  func.func @transform_0(%arg0: i32) -> (i32, i32) {
    %c0_i32 = arith.constant 0 : i32
    %c0_i32_0 = arith.constant 0 : i32
    %c0_i32_1 = arith.constant 0 : i32
    return %c0_i32, %c0_i32_0 : i32, i32
  }
  func.func @transform_1(%arg0: i32) -> (i32, i32) {
    %c0_i32 = arith.constant 0 : i32
    %c0_i32_0 = arith.constant 0 : i32
    %c0_i32_1 = arith.constant 0 : i32
    return %c0_i32, %c0_i32_0 : i32, i32
  }
  func.func @transform_2(%arg0: i32) -> (i32, i32) {
    %c0_i32 = arith.constant 0 : i32
    %c0_i32_0 = arith.constant 0 : i32
    %c0_i32_1 = arith.constant 0 : i32
    return %c0_i32, %c0_i32_0 : i32, i32
  }
  func.func @transform_3(%arg0: i32) -> (i32, i32) {
    %c0_i32 = arith.constant 0 : i32
    %c0_i32_0 = arith.constant 0 : i32
    %c0_i32_1 = arith.constant 0 : i32
    return %c0_i32, %c0_i32_0 : i32, i32
  }
  func.func @transform_4(%arg0: i32) -> (i32, i32) {
    %c0_i32 = arith.constant 0 : i32
    %c0_i32_0 = arith.constant 0 : i32
    %c0_i32_1 = arith.constant 0 : i32
    return %c0_i32, %c0_i32_0 : i32, i32
  }
  func.func @transform_5(%arg0: i32) -> (i32, i32) {
    %c0_i32 = arith.constant 0 : i32
    %c0_i32_0 = arith.constant 0 : i32
    %c0_i32_1 = arith.constant 0 : i32
    return %c0_i32, %c0_i32_0 : i32, i32
  }
  func.func @transform_6(%arg0: i32) -> (i32, i32) {
    %c0_i32 = arith.constant 0 : i32
    %c0_i32_0 = arith.constant 0 : i32
    %c0_i32_1 = arith.constant 0 : i32
    return %c0_i32, %c0_i32_0 : i32, i32
  }
}

</mosaic_0001>

<bundles_post_ra>
// kernel: lstm_classifier_forward.1
= control target key start
LH: loop header
LB: loop body
LE: loop exit
PB: predicated region body
PF: predicated region fallthrough
CT: control target
= control target key end

     0   :  { %12 = vsyncpa [#allocation4], 0  ;;  %s1168_s21 = smov [#allocation3]   ;;  %s1408_s0 = inlined_call_operand.vmem [shape: f32[64,128], index: 0, kind: input, shape index: {}]   ;;  %s1409_s1 = inlined_call_operand.vmem [shape: f32[128,128], index: 1, kind: input, shape index: {}]   ;;  %s1410_s2 = inlined_call_operand.vmem [shape: f32[1,128], index: 2, kind: input, shape index: {}]   ;;  %s1411_s3 = inlined_call_operand.vmem [shape: bf16[32,128], index: 3, kind: input, shape index: {}]   ;;  %s1412_s4 = inlined_call_operand.hbm [shape: f32[32,128], index: 4, kind: input, shape index: {}]   ;;  %s1413_s5 = inlined_call_operand.<no memory space> [shape: f32[1,1], index: 5, kind: input, shape index: {}]   ;;  %s1414_s6 = inlined_call_operand.vmem [shape: f32[8,128], index: 6, kind: output, shape index: {}]  }
   0x1   :  { %s26_s22 = sshll.u32 %s1168_s21, 4  ;;  %s1144_s25 = scalar_lea.hbm %s1412_s4, 512  ;;  %s27_s22 = int_to_ptr.vmem [resolvable:$true] %s26_s22 }
   0x2   :  { %p1145_p0 = scmp.ne.s32.totalorder %s1412_s4, %s1144_s25  ;;  %p1148_p1 = scmp.lt.u32.totalorder %s1144_s25, %s1412_s4 }
   0x4   :  { %p1150_p2 = pnand %p1148_p1, %p1145_p0 }
   0x6   :  { %1153 = shalt.err (!%p1150_p2)
}
   0x7   :  { %s1154_s30 = scalar_lea.vmem %s27_s22, 512  ;;  %p1159_p4 = scmp.lt.s32.totalorder %s27_s22, %s27_s22 }
   0x8   :  { %p1155_p3 = scmp.ne.s32.totalorder %s27_s22, %s1154_s30  ;;  %p1160_p5 = scmp.lt.s32.totalorder %s1154_s30, %s1154_s30 }
   0xa   :  { %p1161_p6 = por %p1160_p5, %p1159_p4 }
   0xc   :  { %p1162_p7 = pnand %p1161_p6, %p1155_p3 }
   0xe   :  { %1165 = shalt.err (!%p1162_p7)
}
   0xf   :  { %s1169_s7 = smov 128   ;;  %s1170_s8 = smov 8  }
  0x10   :  { %32 = dma.hbm_to_vmem [thread:$0]  %s1412_s4, 512, %s27_s22, [#allocation4], %s1169_s7, %s1169_s7, %s1170_s8  }
  0x11   :  { %1166 = dma.done.wait [#allocation4], 512  }
  0x12   :  { %1167 = vsyncadd [#allocation4], 4294966784  ;;  %v47_v0 = vld [vmem:[%s1409_s1] sm:$0xff]  ;;  %v48_v1 = vld [vmem:[%s1409_s1 + $0x8] sm:$0xff]  ;;  %v1172_v38 = vmov 0.0   ;;  %vm1173_vm0 = vmmov 0  }
  0x13   :  { %v49_v2 = vld [vmem:[%s1409_s1 + $0x10] sm:$0xff]  ;;  %v1027_v3 = vpack.c.bf16 %v48_v1, %v47_v0  ;;  %v50_v4 = vld [vmem:[%s1409_s1 + $0x18] sm:$0xff]  ;;  %v51_v6 = vld [vmem:[%s1409_s1 + $0x20] sm:$0xff]  ;;  %960 = vmatprep.subr.bf16.mxu1 %v1172_v38  ;;  %964 = vmatprep.mubr.msk.bf16.mxu1 %vm1173_vm0, %v1172_v38  ;;  %s1174_s26 = smov 96   ;;  %s1175_s27 = smov 32   ;;  %vm213_vm1 = vcmask 261120  }
  0x14   :  { %v1031_v5 = vpack.c.bf16 %v50_v4, %v49_v2  ;;  %v52_v7 = vld [vmem:[%s1409_s1 + $0x28] sm:$0xff]  ;;  %v53_v9 = vld [vmem:[%s1409_s1 + $0x30] sm:$0xff]  ;;  %v54_v10 = vld [vmem:[%s1409_s1 + $0x38] sm:$0xff]  ;;  %vm739_vm2 = vcmask 1040384   ;;  %vm741_vm3 = vcmask 1041408   ;;  %vm743_vm4 = vcmask 1042432  }
  0x15   :  { %1028 = vmatprep.subr.bf16.mxu0 %v1027_v3  ;;  %v1035_v8 = vpack.c.bf16 %v52_v7, %v51_v6  ;;  %v39_v11 = vld [vmem:[%s1408_s0] sm:$0xff]  ;;  %v1039_v12 = vpack.c.bf16 %v54_v10, %v53_v9  ;;  %v56_v14 = vld [vmem:[%s1409_s1 + $0x48] sm:$0xff]  ;;  %v57_v16 = vld [vmem:[%s1409_s1 + $0x50] sm:$0xff]  ;;  %vm745_vm5 = vcmask 1043456   ;;  %vm747_vm6 = vcmask 1044480  }
  0x16   :  { %1030 = vmatpush3.bf16.msra.mxu0 %v1027_v3  ;;  %948 = vmatprep.mubr.f32.mxu0 %v39_v11  ;;  %v55_v13 = vld [vmem:[%s1409_s1 + $0x40] sm:$0xff]  ;;  %v58_v17 = vld [vmem:[%s1409_s1 + $0x58] sm:$0xff]  ;;  %v60_v20 = vld [vmem:[%s1409_s1 + $0x68] sm:$0xff]  ;;  %vm749_vm7 = vcmask 1045504   ;;  %vm751_vm8 = vcmask 1046528  }
  0x17   :  { %1032 = vmatprep.subr.bf16.mxu0 %v1031_v5  ;;  %v1043_v15 = vpack.c.bf16 %v56_v14, %v55_v13  ;;  %v1047_v18 = vpack.c.bf16 %v58_v17, %v57_v16  ;;  %v59_v19 = vld [vmem:[%s1409_s1 + $0x60] sm:$0xff]  ;;  %v61_v22 = vld [vmem:[%s1409_s1 + $0x70] sm:$0xff]  ;;  %v62_v23 = vld [vmem:[%s1409_s1 + $0x78] sm:$0xff]  ;;  %s1171_s1 = smov 64  }
  0x18   :  { %v1051_v21 = vpack.c.bf16 %v60_v20, %v59_v19  ;;  %v1055_v24 = vpack.c.bf16 %v62_v23, %v61_v22  ;;  %v40_v25 = vld [vmem:[%s1408_s0 + $0x8] sm:$0xff]  ;;  %v1281_v26 = vld [vmem:[%s1410_s2] ss:$0 sm:$0xff]  ;;  %v41_v62 = vld [vmem:[%s1408_s0 + $0x10] sm:$0xff] }
  0x19   :  { %v1288_v37 = vld [vmem:[%s1411_s3] sm:$0xff]   ;;  %v1297_v39 = vld [vmem:[%s1411_s3 + $0x8] sm:$0xff]   ;;  %v42_v63 = vld [vmem:[%s1408_s0 + $0x18] sm:$0xff] }
  0x1a   :  { %1034 = vmatpush3.bf16.msra.mxu0 %v1031_v5  ;;  %961 = vmatpush3.bf16.msra.mxu1 %v1288_v37 }
  0x1b   :  { %1036 = vmatprep.subr.bf16.mxu0 %v1035_v8  ;;  %962 = vmatprep.subr.bf16.mxu1 %v1172_v38 }
  0x1e   :  { %1038 = vmatpush3.bf16.msra.mxu0 %v1035_v8  ;;  %963 = vmatpush3.bf16.msra.mxu1 %v1297_v39 }
  0x1f   :  { %1040 = vmatprep.subr.bf16.mxu0 %v1039_v12  ;;  %968 = vmatprep.subr.bf16.mxu1 %v1172_v38 }
  0x22   :  { %1042 = vmatpush3.bf16.msra.mxu0 %v1039_v12 }
  0x23   :  { %1044 = vmatprep.subr.bf16.mxu0 %v1043_v15 }
  0x26   :  { %1046 = vmatpush3.bf16.msra.mxu0 %v1043_v15 }
  0x27   :  { %1048 = vmatprep.subr.bf16.mxu0 %v1047_v18 }
  0x2a   :  { %1050 = vmatpush3.bf16.msra.mxu0 %v1047_v18 }
  0x2b   :  { %1052 = vmatprep.subr.bf16.mxu0 %v1051_v21 }
  0x2e   :  { %1054 = vmatpush3.bf16.msra.mxu0 %v1051_v21 }
  0x2f   :  { %1056 = vmatprep.subr.bf16.mxu0 %v1055_v24 }
  0x32   :  { %1058 = vmatpush3.bf16.msra.mxu0 %v1055_v24 }
  0x33   :  { %1000 = vmatprep.subr.bf16.mxu0 %v1172_v38 }
  0x35   :  { %949 = vmatmul.mubr.f32.vlgmr.msra.gmra.mrb[0].mxu0 %v40_v25 }
  0x36   :  { %1001 = vmatpush3.bf16.msra.mxu0 %v1288_v37  ;;  %951 = vmatprep.mubr.f32.mxu0 %v41_v62 }
  0x37   :  { %1002 = vmatprep.subr.bf16.mxu0 %v1172_v38 }
  0x39   :  { %952 = vmatmul.mubr.f32.gmra.mrb[2].mxu0 %v42_v63 }
  0x3a   :  { %1003 = vmatpush3.bf16.msra.mxu0 %v1297_v39 }
 0x108   :  { %v950_v27 = vpop.f32.mrb[0].mxu0 }
 0x109   :  { %v136_v28 = vpop.f32.mrb[1].mxu0  ;;  %v142_v45 = vadd.f32 %v950_v27, %v1281_v26 }
 0x10a   :  { %v137_v29 = vadd.f32 %v1281_v26, %v136_v28 }
 0x10c   :  { %1076 = vtanh.f32 %v137_v29  ;;  %v847_v31 = vmul.f32 -1.442695, %v137_v29  ;;  %v953_v7 = vpop.f32.mrb[2].mxu0 }
 0x10d   :  { %v146_v8 = vpop.f32.mrb[3].mxu0 }
 0x10e   :  { %1078 = vpow2.f32 %v847_v31  ;;  %v147_v10 = vadd.f32 %v1281_v26, %v146_v8 }
 0x116   :  { %v1077_v30 = vpop.eup %1076 }
 0x117   :  { %187 = vrot.lane.b32.xlu0 %v1077_v30, %s1171_s1 }
 0x118   :  { %v1079_v32 = vpop.eup %1078 }
 0x119   :  { %v182_v33 = vadd.f32 1.0, %v1079_v32 }
 0x11b   :  { %1080 = vrcp.f32 %v182_v33 }
 0x125   :  { %v1081_v34 = vpop.eup %1080 }
 0x189   :  { %v188_v35 = vpop.permute.xlu0 %187 }
 0x18a   :  { %v190_v36 = vmul.f32 %v1081_v34, %v188_v35 }
 0x18c   :  { %1082 = vtanh.f32 %v190_v36 }
 0x196   :  { %v1083_v40 = vpop.eup %1082 }
 0x197   :  { %193 = vrot.lane.b32.xlu0 %v1083_v40, %s1174_s26 }
 0x19b   :  { %266 = vrot.lane.b32.xlu0 %v190_v36, %s1175_s27 }
 0x209   :  { %v194_v41 = vpop.permute.xlu0 %193 }
 0x20a   :  { %v196_v42 = vmul.f32 %v1081_v34, %v194_v41  ;;  %v152_v34 = vadd.f32 %v953_v7, %v1281_v26 }
 0x20c   :  { %v197_v43 = vpack.c.bf16 %v196_v42, %v196_v42  ;;  %v719_v3 = vrot.slane %v196_v42, 7 }
 0x20d   :  { %v267_v58 = vpop.permute.xlu0 %266 }
 0x20e   :  { %199 = vrot.lane.b32.xlu1 %v197_v43, %s1175_s27 }
 0x280   :  { %v200_v44 = vpop.permute.xlu1 %199 }
 0x281   :  { %965 = vmatmul.mubr.msk.bf16.vlgmr.msra.gmra.mrb[0].mxu1 %vm213_vm1, %v200_v44 }
 0x282   :  { %969 = vmatpush3.bf16.msra.mxu1 %v1288_v37  ;;  %972 = vmatprep.mubr.msk.bf16.mxu1 %vm1173_vm0, %v1172_v38 }
 0x283   :  { %970 = vmatprep.subr.bf16.mxu1 %v1172_v38 }
 0x286   :  { %971 = vmatpush3.bf16.msra.mxu1 %v1297_v39 }
 0x287   :  { %976 = vmatprep.subr.bf16.mxu1 %v1172_v38 }
 0x354   :  { %v251_v46 = vpop.f32.mrb[0].mxu1 }
 0x355   :  { %v257_v47 = vadd.f32 %v251_v46, %v142_v45  ;;  %v966_v48 = vpop.f32.mrb[1].mxu1 }
 0x356   :  { %v254_v49 = vpop.f32.mrb[2].mxu1 }
 0x357   :  { %1084 = vtanh.f32 %v257_v47  ;;  %v967_v50 = vpop.f32.mrb[3].mxu1  ;;  %v851_v52 = vmul.f32 -1.442695, %v257_v47 }
 0x359   :  { %1086 = vpow2.f32 %v851_v52 }
 0x361   :  { %v1085_v51 = vpop.eup %1084 }
 0x362   :  { %271 = vrot.lane.b32.xlu1 %v1085_v51, %s1171_s1 }
 0x363   :  { %v1087_v53 = vpop.eup %1086 }
 0x364   :  { %v261_v54 = vadd.f32 1.0, %v1087_v53  ;;  %v43_v53 = vld [vmem:[%s1408_s0 + $0x20] sm:$0xff] }
 0x365   :  { %954 = vmatprep.mubr.f32.mxu0 %v43_v53 }
 0x366   :  { %1088 = vrcp.f32 %v261_v54  ;;  %v44_v54 = vld [vmem:[%s1408_s0 + $0x28] sm:$0xff] }
 0x367   :  { %955 = vmatmul.mubr.f32.gmra.mrb[4].mxu0 %v44_v54 }
 0x370   :  { %v1089_v55 = vpop.eup %1088 }
 0x371   :  { %v269_v59 = vmul.f32 %v1089_v55, %v267_v58 }
 0x3d4   :  { %v272_v56 = vpop.permute.xlu1 %271 }
 0x3d5   :  { %v274_v57 = vmul.f32 %v1089_v55, %v272_v56 }
 0x3d7   :  { %276 = vrot.lane.b32.xlu1 %v274_v57, %s1175_s27 }
 0x449   :  { %v277_v60 = vpop.permute.xlu1 %276 }
 0x44a   :  { %v279_v61 = vadd.f32 %v277_v60, %v269_v59 }
 0x44c   :  { %1090 = vtanh.f32 %v279_v61 }
 0x456   :  { %v1091_v0 = vpop.eup %1090 }
 0x457   :  { %282 = vrot.lane.b32.xlu0 %v1091_v0, %s1171_s1 }
 0x4c9   :  { %v283_v1 = vpop.permute.xlu0 %282 }
 0x4ca   :  { %v285_v2 = vmul.f32 %v1089_v55, %v283_v1 }
 0x4cc   :  { %v286_v4 = vpack.c.bf16 %v285_v2, %v285_v2  ;;  %v722_v5 = vrot.slane %v285_v2, 6 }
 0x4ce   :  { %v740_v6 = vsel %vm739_vm2, %v719_v3, %v722_v5  ;;  %288 = vrot.lane.b32.xlu1 %v286_v4, %s1175_s27 }
 0x540   :  { %v289_v9 = vpop.permute.xlu1 %288 }
 0x541   :  { %973 = vmatmul.mubr.msk.bf16.vlgmr.msra.gmra.mrb[4].mxu1 %vm213_vm1, %v289_v9 }
 0x542   :  { %977 = vmatpush3.bf16.msra.mxu1 %v1288_v37  ;;  %980 = vmatprep.mubr.msk.bf16.mxu1 %vm1173_vm0, %v1172_v38 }
 0x543   :  { %978 = vmatprep.subr.bf16.mxu1 %v1172_v38 }
 0x546   :  { %979 = vmatpush3.bf16.msra.mxu1 %v1297_v39 }
 0x547   :  { %984 = vmatprep.subr.bf16.mxu1 %v1172_v38 }
 0x614   :  { %v327_v11 = vpop.f32.mrb[4].mxu1 }
 0x615   :  { %v333_v12 = vadd.f32 %v327_v11, %v147_v10  ;;  %v974_v13 = vpop.f32.mrb[5].mxu1 }
 0x616   :  { %v330_v14 = vpop.f32.mrb[6].mxu1 }
 0x617   :  { %1092 = vtanh.f32 %v333_v12  ;;  %v975_v15 = vpop.f32.mrb[7].mxu1  ;;  %v853_v17 = vmul.f32 -1.442695, %v333_v12 }
 0x619   :  { %1094 = vpow2.f32 %v853_v17 }
 0x621   :  { %v1093_v16 = vpop.eup %1092 }
 0x622   :  { %343 = vrot.lane.b32.xlu0 %v1093_v16, %s1171_s1 }
 0x623   :  { %v1095_v18 = vpop.eup %1094 }
 0x624   :  { %v337_v19 = vadd.f32 1.0, %v1095_v18 }
 0x626   :  { %1096 = vrcp.f32 %v337_v19 }
 0x630   :  { %v1097_v20 = vpop.eup %1096 }
 0x631   :  { %v341_v23 = vmul.f32 %v1097_v20, %v279_v61  ;;  %v956_v61 = vpop.f32.mrb[4].mxu0 }
 0x632   :  { %v156_v62 = vpop.f32.mrb[5].mxu0 }
 0x633   :  { %v157_v0 = vadd.f32 %v1281_v26, %v156_v62 }
 0x694   :  { %v344_v21 = vpop.permute.xlu0 %343 }
 0x695   :  { %v346_v22 = vmul.f32 %v1097_v20, %v344_v21 }
 0x697   :  { %348 = vrot.lane.b32.xlu1 %v346_v22, %s1175_s27 }
 0x709   :  { %v349_v24 = vpop.permute.xlu1 %348 }
 0x70a   :  { %v351_v25 = vadd.f32 %v349_v24, %v341_v23  ;;  %v162_v23 = vadd.f32 %v956_v61, %v1281_v26 }
 0x70c   :  { %1098 = vtanh.f32 %v351_v25 }
 0x716   :  { %v1099_v27 = vpop.eup %1098 }
 0x717   :  { %354 = vrot.lane.b32.xlu0 %v1099_v27, %s1171_s1 }
 0x789   :  { %v355_v28 = vpop.permute.xlu0 %354 }
 0x78a   :  { %v357_v29 = vmul.f32 %v1097_v20, %v355_v28 }
 0x78c   :  { %v358_v30 = vpack.c.bf16 %v357_v29, %v357_v29  ;;  %v725_v31 = vrot.slane %v357_v29, 5 }
 0x78e   :  { %v742_v32 = vsel %vm741_vm3, %v740_v6, %v725_v31  ;;  %360 = vrot.lane.b32.xlu1 %v358_v30, %s1175_s27 }
 0x800   :  { %v361_v33 = vpop.permute.xlu1 %360 }
 0x801   :  { %981 = vmatmul.mubr.msk.bf16.vlgmr.msra.gmra.mrb[8].mxu1 %vm213_vm1, %v361_v33 }
 0x802   :  { %985 = vmatpush3.bf16.msra.mxu1 %v1288_v37  ;;  %988 = vmatprep.mubr.msk.bf16.mxu1 %vm1173_vm0, %v1172_v38 }
 0x803   :  { %986 = vmatprep.subr.bf16.mxu1 %v1172_v38 }
 0x806   :  { %987 = vmatpush3.bf16.msra.mxu1 %v1297_v39 }
 0x807   :  { %992 = vmatprep.subr.bf16.mxu1 %v1172_v38 }
 0x8d4   :  { %v399_v35 = vpop.f32.mrb[8].mxu1 }
 0x8d5   :  { %v405_v36 = vadd.f32 %v399_v35, %v152_v34  ;;  %v982_v40 = vpop.f32.mrb[9].mxu1 }
 0x8d6   :  { %v402_v41 = vpop.f32.mrb[10].mxu1 }
 0x8d7   :  { %1100 = vtanh.f32 %v405_v36  ;;  %v983_v42 = vpop.f32.mrb[11].mxu1  ;;  %v855_v44 = vmul.f32 -1.442695, %v405_v36  ;;  %v45_v41 = vld [vmem:[%s1408_s0 + $0x30] sm:$0xff] }
 0x8d8   :  { %v46_v42 = vld [vmem:[%s1408_s0 + $0x38] sm:$0xff]  ;;  %957 = vmatprep.mubr.f32.mxu0 %v45_v41 }
 0x8d9   :  { %1102 = vpow2.f32 %v855_v44  ;;  %958 = vmatmul.mubr.f32.gmra.mrb[6].mxu0 %v46_v42 }
 0x8da   :  { %1004 = vmatprep.mubr.msk.bf16.mxu0 %vm1173_vm0, %v1172_v38 }
 0x8e1   :  { %v1101_v43 = vpop.eup %1100 }
 0x8e2   :  { %415 = vrot.lane.b32.xlu0 %v1101_v43, %s1171_s1 }
 0x8e3   :  { %v1103_v45 = vpop.eup %1102 }
 0x8e4   :  { %v409_v46 = vadd.f32 1.0, %v1103_v45 }
 0x8e6   :  { %1104 = vrcp.f32 %v409_v46 }
 0x8f0   :  { %v1105_v47 = vpop.eup %1104 }
 0x8f1   :  { %v413_v50 = vmul.f32 %v1105_v47, %v351_v25 }
 0x954   :  { %v416_v48 = vpop.permute.xlu0 %415 }
 0x955   :  { %v418_v49 = vmul.f32 %v1105_v47, %v416_v48 }
 0x957   :  { %420 = vrot.lane.b32.xlu1 %v418_v49, %s1175_s27 }
 0x9ac   :  { %v959_v49 = vpop.f32.mrb[6].mxu0 }
 0x9c9   :  { %v421_v51 = vpop.permute.xlu1 %420 }
 0x9ca   :  { %v423_v52 = vadd.f32 %v421_v51, %v413_v50  ;;  %v166_v50 = vpop.f32.mrb[7].mxu0 }
 0x9cc   :  { %1106 = vtanh.f32 %v423_v52 }
 0x9d6   :  { %v1107_v55 = vpop.eup %1106 }
 0x9d7   :  { %426 = vrot.lane.b32.xlu0 %v1107_v55, %s1171_s1 }
 0xa49   :  { %v427_v56 = vpop.permute.xlu0 %426 }
 0xa4a   :  { %v429_v57 = vmul.f32 %v1105_v47, %v427_v56 }
 0xa4c   :  { %v430_v58 = vpack.c.bf16 %v429_v57, %v429_v57  ;;  %v728_v59 = vrot.slane %v429_v57, 4 }
 0xa4e   :  { %v744_v60 = vsel %vm743_vm4, %v742_v32, %v728_v59  ;;  %432 = vrot.lane.b32.xlu1 %v430_v58, %s1175_s27 }
 0xac0   :  { %v433_v63 = vpop.permute.xlu1 %432 }
 0xac1   :  { %989 = vmatmul.mubr.msk.bf16.vlgmr.msra.gmra.mrb[12].mxu1 %vm213_vm1, %v433_v63 }
 0xac2   :  { %993 = vmatpush3.bf16.msra.mxu1 %v1288_v37  ;;  %996 = vmatprep.mubr.msk.bf16.mxu1 %vm1173_vm0, %v1172_v38 }
 0xac3   :  { %994 = vmatprep.subr.bf16.mxu1 %v1172_v38 }
 0xac6   :  { %995 = vmatpush3.bf16.msra.mxu1 %v1297_v39 }
 0xac7   :  { %1008 = vmatprep.subr.bf16.mxu1 %v1172_v38 }
 0xb94   :  { %v471_v1 = vpop.f32.mrb[12].mxu1 }
 0xb95   :  { %v477_v2 = vadd.f32 %v471_v1, %v157_v0  ;;  %v990_v3 = vpop.f32.mrb[13].mxu1 }
 0xb96   :  { %v474_v4 = vpop.f32.mrb[14].mxu1 }
 0xb97   :  { %1108 = vtanh.f32 %v477_v2  ;;  %v991_v5 = vpop.f32.mrb[15].mxu1  ;;  %v857_v7 = vmul.f32 -1.442695, %v477_v2 }
 0xb99   :  { %1110 = vpow2.f32 %v857_v7 }
 0xba1   :  { %v1109_v6 = vpop.eup %1108 }
 0xba2   :  { %487 = vrot.lane.b32.xlu0 %v1109_v6, %s1171_s1 }
 0xba3   :  { %v1111_v8 = vpop.eup %1110 }
 0xba4   :  { %v481_v9 = vadd.f32 1.0, %v1111_v8 }
 0xba6   :  { %1112 = vrcp.f32 %v481_v9 }
 0xbb0   :  { %v1113_v10 = vpop.eup %1112 }
 0xbb1   :  { %v485_v13 = vmul.f32 %v1113_v10, %v423_v52  ;;  %v167_v52 = vadd.f32 %v1281_v26, %v166_v50 }
 0xc14   :  { %v488_v11 = vpop.permute.xlu0 %487 }
 0xc15   :  { %v490_v12 = vmul.f32 %v1113_v10, %v488_v11 }
 0xc17   :  { %492 = vrot.lane.b32.xlu1 %v490_v12, %s1175_s27 }
 0xc89   :  { %v493_v14 = vpop.permute.xlu1 %492 }
 0xc8a   :  { %v495_v15 = vadd.f32 %v493_v14, %v485_v13 }
 0xc8c   :  { %1114 = vtanh.f32 %v495_v15 }
 0xc96   :  { %v1115_v16 = vpop.eup %1114 }
 0xc97   :  { %498 = vrot.lane.b32.xlu0 %v1115_v16, %s1171_s1 }
 0xd09   :  { %v499_v17 = vpop.permute.xlu0 %498 }
 0xd0a   :  { %v501_v18 = vmul.f32 %v1113_v10, %v499_v17  ;;  %v172_v10 = vadd.f32 %v959_v49, %v1281_v26 }
 0xd0c   :  { %v502_v19 = vpack.c.bf16 %v501_v18, %v501_v18  ;;  %v731_v20 = vrot.slane %v501_v18, 3 }
 0xd0e   :  { %v746_v21 = vsel %vm745_vm5, %v744_v60, %v731_v20  ;;  %504 = vrot.lane.b32.xlu1 %v502_v19, %s1175_s27 }
 0xd80   :  { %v505_v22 = vpop.permute.xlu1 %504 }
 0xd81   :  { %997 = vmatmul.mubr.msk.bf16.vlgmr.msra.gmra.mrb[16].mxu1 %vm213_vm1, %v505_v22 }
 0xd82   :  { %1009 = vmatpush3.bf16.msra.mxu1 %v1288_v37  ;;  %1012 = vmatprep.mubr.msk.bf16.mxu1 %vm1173_vm0, %v1172_v38 }
 0xd83   :  { %1010 = vmatprep.subr.bf16.mxu1 %v1172_v38 }
 0xd86   :  { %1011 = vmatpush3.bf16.msra.mxu1 %v1297_v39 }
 0xe54   :  { %v543_v24 = vpop.f32.mrb[16].mxu1 }
 0xe55   :  { %v549_v25 = vadd.f32 %v543_v24, %v162_v23  ;;  %v998_v27 = vpop.f32.mrb[17].mxu1 }
 0xe56   :  { %v546_v28 = vpop.f32.mrb[18].mxu1  ;;  %v754_v27 = vld [vmem:[#allocation3 + $0x8] sm:$0xff] }
 0xe57   :  { %1116 = vtanh.f32 %v549_v25  ;;  %v999_v29 = vpop.f32.mrb[19].mxu1  ;;  %v859_v31 = vmul.f32 -1.442695, %v549_v25  ;;  %v753_v25 = vld [vmem:[#allocation3] sm:$0xff]  ;;  %v755_v28 = vld [vmem:[#allocation3 + $0x10] sm:$0xff] }
 0xe58   :  { %v1176_v29 = vmov 0.0|0.0  }
 0xe59   :  { %1118 = vpow2.f32 %v859_v31  ;;  %1059 = vmatprep.subr.bf16.mxu0 %v1176_v29  ;;  %v756_v31 = vld [vmem:[#allocation3 + $0x18] sm:$0xff] }
 0xe61   :  { %v1117_v30 = vpop.eup %1116 }
 0xe62   :  { %559 = vrot.lane.b32.xlu0 %v1117_v30, %s1171_s1  ;;  %v1060_v30 = vpack.c.bf16 %v754_v27, %v753_v25 }
 0xe63   :  { %v1119_v37 = vpop.eup %1118 }
 0xe64   :  { %v553_v32 = vadd.f32 1.0, %v1119_v37  ;;  %v1063_v37 = vpack.c.bf16 %v756_v31, %v755_v28 }
 0xe66   :  { %1120 = vrcp.f32 %v553_v32 }
 0xe70   :  { %v1121_v33 = vpop.eup %1120 }
 0xe71   :  { %v557_v39 = vmul.f32 %v1121_v33, %v495_v15 }
 0xed4   :  { %v560_v34 = vpop.permute.xlu0 %559 }
 0xed5   :  { %v562_v35 = vmul.f32 %v1121_v33, %v560_v34 }
 0xed7   :  { %564 = vrot.lane.b32.xlu1 %v562_v35, %s1175_s27 }
 0xf49   :  { %v565_v36 = vpop.permute.xlu1 %564 }
 0xf4a   :  { %v567_v40 = vadd.f32 %v565_v36, %v557_v39  ;;  %v758_v36 = vstv %s1413_s5 }
 0xf4c   :  { %1122 = vtanh.f32 %v567_v40 }
 0xf56   :  { %v1123_v43 = vpop.eup %1122 }
 0xf57   :  { %570 = vrot.lane.b32.xlu0 %v1123_v43, %s1171_s1 }
 0xfc9   :  { %v571_v44 = vpop.permute.xlu0 %570 }
 0xfca   :  { %v573_v45 = vmul.f32 %v1121_v33, %v571_v44 }
 0xfcc   :  { %v574_v46 = vpack.c.bf16 %v573_v45, %v573_v45  ;;  %v734_v47 = vrot.slane %v573_v45, 2 }
 0xfce   :  { %576 = vrot.lane.b32.xlu1 %v574_v46, %s1175_s27  ;;  %v748_v48 = vsel %vm747_vm6, %v746_v21, %v734_v47 }
0x1040   :  { %v577_v51 = vpop.permute.xlu1 %576 }
0x1041   :  { %1005 = vmatmul.mubr.msk.bf16.vlgmr.msra.gmra.mrb[8].mxu0 %vm213_vm1, %v577_v51 }
0x1042   :  { %1024 = vmatprep.mubr.msk.f32.mxu0 %vm1173_vm0, %v1172_v38  ;;  %1061 = vmatpush3.bf16.msra.mxu0 %v1060_v30 }
0x1043   :  { %1062 = vmatprep.subr.bf16.mxu0 %v1176_v29 }
0x1046   :  { %1064 = vmatpush3.bf16.msra.mxu0 %v1063_v37 }
0x1114   :  { %v615_v53 = vpop.f32.mrb[8].mxu0 }
0x1115   :  { %v621_v54 = vadd.f32 %v615_v53, %v167_v52  ;;  %v1006_v55 = vpop.f32.mrb[9].mxu0 }
0x1116   :  { %v618_v56 = vpop.f32.mrb[10].mxu0 }
0x1117   :  { %1124 = vtanh.f32 %v621_v54  ;;  %v1007_v57 = vpop.f32.mrb[11].mxu0  ;;  %v861_v59 = vmul.f32 -1.442695, %v621_v54 }
0x1119   :  { %1126 = vpow2.f32 %v861_v59 }
0x1121   :  { %v1125_v58 = vpop.eup %1124 }
0x1122   :  { %631 = vrot.lane.b32.xlu0 %v1125_v58, %s1171_s1 }
0x1123   :  { %v1127_v60 = vpop.eup %1126 }
0x1124   :  { %v625_v61 = vadd.f32 1.0, %v1127_v60 }
0x1126   :  { %1128 = vrcp.f32 %v625_v61 }
0x1130   :  { %v1129_v62 = vpop.eup %1128 }
0x1131   :  { %v629_v38 = vmul.f32 %v1129_v62, %v567_v40 }
0x1194   :  { %v632_v63 = vpop.permute.xlu0 %631 }
0x1195   :  { %v634_v0 = vmul.f32 %v1129_v62, %v632_v63 }
0x1197   :  { %636 = vrot.lane.b32.xlu1 %v634_v0, %s1175_s27 }
0x1209   :  { %v637_v1 = vpop.permute.xlu1 %636 }
0x120a   :  { %v639_v2 = vadd.f32 %v637_v1, %v629_v38 }
0x120c   :  { %1130 = vtanh.f32 %v639_v2 }
0x1216   :  { %v1131_v3 = vpop.eup %1130 }
0x1217   :  { %642 = vrot.lane.b32.xlu0 %v1131_v3, %s1171_s1 }
0x1289   :  { %v643_v4 = vpop.permute.xlu0 %642 }
0x128a   :  { %v645_v5 = vmul.f32 %v1129_v62, %v643_v4 }
0x128c   :  { %v646_v6 = vpack.c.bf16 %v645_v5, %v645_v5  ;;  %v737_v7 = vrot.slane %v645_v5, 1 }
0x128e   :  { %648 = vrot.lane.b32.xlu1 %v646_v6, %s1175_s27  ;;  %v750_v8 = vsel %vm749_vm7, %v748_v48, %v737_v7 }
0x1300   :  { %v649_v9 = vpop.permute.xlu1 %648 }
0x1301   :  { %1013 = vmatmul.mubr.msk.bf16.vlgmr.msra.gmra.mrb[20].mxu1 %vm213_vm1, %v649_v9 }
0x13d4   :  { %v687_v11 = vpop.f32.mrb[20].mxu1 }
0x13d5   :  { %v693_v12 = vadd.f32 %v687_v11, %v172_v10  ;;  %v1014_v13 = vpop.f32.mrb[21].mxu1 }
0x13d6   :  { %v690_v14 = vpop.f32.mrb[22].mxu1 }
0x13d7   :  { %1132 = vtanh.f32 %v693_v12  ;;  %v1015_v15 = vpop.f32.mrb[23].mxu1  ;;  %v863_v17 = vmul.f32 -1.442695, %v693_v12 }
0x13d9   :  { %1134 = vpow2.f32 %v863_v17 }
0x13e1   :  { %v1133_v16 = vpop.eup %1132 }
0x13e2   :  { %703 = vrot.lane.b32.xlu0 %v1133_v16, %s1171_s1 }
0x13e3   :  { %v1135_v18 = vpop.eup %1134 }
0x13e4   :  { %v697_v19 = vadd.f32 1.0, %v1135_v18 }
0x13e6   :  { %1136 = vrcp.f32 %v697_v19 }
0x13f0   :  { %v1137_v20 = vpop.eup %1136 }
0x13f1   :  { %v701_v26 = vmul.f32 %v1137_v20, %v639_v2 }
0x1454   :  { %v704_v21 = vpop.permute.xlu0 %703 }
0x1455   :  { %v706_v22 = vmul.f32 %v1137_v20, %v704_v21 }
0x1457   :  { %708 = vrot.lane.b32.xlu1 %v706_v22, %s1175_s27 }
0x14c9   :  { %v709_v23 = vpop.permute.xlu1 %708 }
0x14ca   :  { %v711_v24 = vadd.f32 %v709_v23, %v701_v26 }
0x14cc   :  { %1138 = vtanh.f32 %v711_v24 }
0x14d6   :  { %v1139_v32 = vpop.eup %1138 }
0x14d7   :  { %714 = vrot.lane.b32.xlu0 %v1139_v32, %s1171_s1 }
0x1549   :  { %v715_v33 = vpop.permute.xlu0 %714 }
0x154a   :  { %v717_v34 = vmul.f32 %v1137_v20, %v715_v33 }
0x154c   :  { %v752_v35 = vsel %vm751_vm8, %v750_v8, %v717_v34 }
0x154d   :  { %760 = vrot.lane.b32.xlu1 %v752_v35, %s1175_s27 }
0x15bf   :  { %v761_v39 = vpop.permute.xlu1 %760 }
0x15c0   :  { %1025 = vmatmul.mubr.msk.f32.vlgmr.msra.gmra.mrb[12].mxu0 %vm213_vm1, %v761_v39 }
0x1693   :  { %v830_v40 = vpop.f32.mrb[12].mxu0 }
0x1694   :  { %v831_v41 = vadd.f32 %v830_v40, %v758_v36  ;;  %v1026_v42 = vpop.f32.mrb[13].mxu0 }
0x1696   :  { %v865_v43 = vmul.f32 -1.442695, %v831_v41 }
0x1698   :  { %1140 = vpow2.f32 %v865_v43 }
0x16a2   :  { %v1141_v44 = vpop.eup %1140 }
0x16a3   :  { %v837_v45 = vadd.f32 1.0, %v1141_v44 }
0x16a5   :  { %1142 = vrcp.f32 %v837_v45 }
0x16af   :  { %v1143_v46 = vpop.eup %1142 }
0x16b0   :  { %840 = vst [vmem:[%s1414_s6] sm:$0xff] %v1143_v46 }
0x16b1   :  { %845 = vsyncpa [#allocation4], 1 }

</bundles_post_ra>
